<compile_context>
chip_gen: v7x
topology: tpu7x:2x2x1
jax: 0.10.0
libtpu: 0.0.40
codegen_flags: <defaults>
</compile_context>

<pallas_src>
import functools

import jax
import jax.numpy as jnp
from jax.experimental import pallas as pl
from jax.experimental.pallas import tpu as pltpu


def basic_block_kernel(Wp, x_ref, w1_ref, b1_ref, w2_ref, b2_ref, mask_ref,
                       o_ref, col_ref):
    # x_ref   : (1, Cin, Lb)   bf16 zero-padded input; Lb = batch_block*L with
    #                          the lane axis laid out [img0 slab | img1 | ...]
    # w1_ref  : (Cout, 9*Cin)  bf16 conv1 weights (BN1 scale folded in)
    # b1_ref  : (Cout, 1)      f32 folded BN1 bias
    # w2_ref  : (Cout, 9*Cout) bf16 conv2 weights (BN2 scale folded in)
    # b2_ref  : (Cout, 1)      f32 folded BN2 bias
    # mask_ref: (1, Lb)        f32: 1.0 at interior pixels, 0.0 at halo / tail
    # o_ref   : (1, Cout, Lb)  f32 output slab (interior extracted by wrapper)
    # col_ref : (9*Cin, Lb)    f32 im2col scratch (reused for both convs)
    xf = x_ref[0].astype(jnp.float32)     # (Cin, Lb); f32 copy also = residual
    mask = mask_ref[...]                  # (1, Lb)
    Cin = xf.shape[0]
    Lb = xf.shape[1]
    Cout = o_ref.shape[1]

    def im2col(a, c):
        # Stack 9 lane-rolled copies of `a` along sublanes.  A shift of
        # (dy-1)*Wp + (dx-1) on the flattened padded spatial axis is exactly
        # the (dy, dx) conv tap; the circular wrap (incl. wrap into the
        # neighbouring image's slab when the batch is folded onto lanes) only
        # lands on halo/tail positions, which are discarded (conv output) or
        # masked to zero (conv2 input), so the roll is safe.
        for k in range(9):
            dy, dx = k // 3, k % 3
            off = (dy - 1) * Wp + (dx - 1)
            col_ref[k * c:(k + 1) * c, :] = pltpu.roll(a, (-off) % Lb, 1)

    # ---- conv1 (scale folded) -> bias -> ReLU -> zero halo/tail for conv2 ----
    im2col(xf, Cin)
    acc1 = jnp.dot(w1_ref[...], col_ref[...].astype(jnp.bfloat16),
                   preferred_element_type=jnp.float32)          # (Cout, Lb) f32
    h = jnp.maximum(acc1 + b1_ref[...], 0.0) * mask             # f32

    # ---- conv2 (scale folded) -> bias -> +identity residual -> ReLU ----
    im2col(h, Cout)
    acc2 = jnp.dot(w2_ref[...], col_ref[...].astype(jnp.bfloat16),
                   preferred_element_type=jnp.float32)          # (Cout, Lb) f32
    o_ref[0] = jnp.maximum(acc2 + b2_ref[...] + xf, 0.0)


def basic_block_forward(x_nchw, w1, g1, be1, m1, v1, w2, g2, be2, m2, v2,
                        eps=1e-5, batch_block=None, vmem_limit_bytes=None):
    """NCHW in / NCHW out, matching PyTorch BasicBlock.forward (eval-mode BN).

    batch_block: images packed per grid step onto the lane axis.  Default =
      whole batch (one grid step; best on v5e/v6e with a single TensorCore).
      On v7x use batch_block = ceil(B/2) so the "parallel" grid has >=2 steps
      for megacore sharding.
    vmem_limit_bytes: per-generation scoped-VMEM override (raise toward
      64-100 MiB on v5e/v6e for big blocks, keep <=~48 MiB on v7x);
      None = compiler default, plenty for the demo size.
    """
    B, Cin, H, W = x_nchw.shape
    Cout = w1.shape[0]
    assert Cin == Cout, "identity residual requires inplanes == planes"
    assert w1.shape[1:] == (Cin, 3, 3) and w2.shape[1:] == (Cout, 3, 3)

    if batch_block is None:
        batch_block = B                     # fold the whole batch onto lanes
    assert B % batch_block == 0, "batch must be divisible by batch_block"
    G = B // batch_block

    Hp, Wp = H + 2, W + 2
    HpWp = Hp * Wp
    L = pl.cdiv(HpWp, 128) * 128            # per-image lane-dense slab length
    Lb = batch_block * L
    # 3x3 / pad-1 invariant: every tap of an interior pixel stays inside that
    # pixel's own padded slab, so the circular roll never aliases interior data.
    assert Wp + 1 < HpWp <= L

    # Channel-major stays NCHW: spatial halo pad, flatten, pad to a lane
    # multiple, then pack `batch_block` images side-by-side on the lane axis.
    xp = jnp.pad(x_nchw, ((0, 0), (0, 0), (1, 1), (1, 1)))
    x_flat = jnp.pad(xp.reshape(B, Cin, HpWp), ((0, 0), (0, 0), (0, L - HpWp)))
    x_grp = (x_flat.reshape(G, batch_block, Cin, L)
             .transpose(0, 2, 1, 3)
             .reshape(G, Cin, Lb)
             .astype(jnp.bfloat16))          # halve activation HBM DMA

    # Fold eval-mode BN scale into conv weights (bf16); per-channel bias in f32.
    s1 = g1 / jnp.sqrt(v1 + eps)
    b1 = (be1 - m1 * s1).reshape(Cout, 1).astype(jnp.float32)
    s2 = g2 / jnp.sqrt(v2 + eps)
    b2 = (be2 - m2 * s2).reshape(Cout, 1).astype(jnp.float32)
    # OIHW -> (Cout, 9*Cin), tap-major / channel-minor to match the im2col
    # sublane layout (row k*Cin + c  <->  tap k, input channel c).
    w1m = ((w1 * s1[:, None, None, None]).transpose(0, 2, 3, 1)
           .reshape(Cout, 9 * Cin).astype(jnp.bfloat16))
    w2m = ((w2 * s2[:, None, None, None]).transpose(0, 2, 3, 1)
           .reshape(Cout, 9 * Cout).astype(jnp.bfloat16))

    # Interior mask over the flattened padded spatial axis, tiled per image.
    m2d = jnp.zeros((Hp, Wp), jnp.float32).at[1:H + 1, 1:W + 1].set(1.0)
    mask = jnp.pad(m2d.reshape(1, HpWp), ((0, 0), (0, L - HpWp)))
    mask = jnp.tile(mask, (1, batch_block))                     # (1, Lb)

    flops = 2 * B * H * W * 9 * Cout * (Cin + Cout)
    bytes_accessed = (2 * B * Cin * L + 4 * B * Cout * L
                      + 2 * 9 * Cout * (Cin + Cout) + 8 * Cout + 4 * Lb)

    out_grp = pl.pallas_call(
        functools.partial(basic_block_kernel, Wp),
        out_shape=jax.ShapeDtypeStruct((G, Cout, Lb), jnp.float32),
        grid_spec=pltpu.PrefetchScalarGridSpec(
            num_scalar_prefetch=0,
            grid=(G,),
            in_specs=[
                pl.BlockSpec((1, Cin, Lb), lambda g: (g, 0, 0)),
                # Loop-invariant operands: constant index_map -> fetched once.
                pl.BlockSpec((Cout, 9 * Cin), lambda g: (0, 0)),
                pl.BlockSpec((Cout, 1), lambda g: (0, 0)),
                pl.BlockSpec((Cout, 9 * Cout), lambda g: (0, 0)),
                pl.BlockSpec((Cout, 1), lambda g: (0, 0)),
                pl.BlockSpec((1, Lb), lambda g: (0, 0)),
            ],
            out_specs=pl.BlockSpec((1, Cout, Lb), lambda g: (g, 0, 0)),
            scratch_shapes=[pltpu.VMEM((9 * Cin, Lb), jnp.float32)],
        ),
        compiler_params=pltpu.CompilerParams(
            dimension_semantics=("parallel",),
            vmem_limit_bytes=vmem_limit_bytes),
        cost_estimate=pl.CostEstimate(flops=flops, transcendentals=0,
                                      bytes_accessed=bytes_accessed),
    )(x_grp, w1m, b1, w2m, b2, mask)

    # Un-fold the batch, then slice the interior back out (XLA glue, all NCHW).
    out_flat = (out_grp.reshape(G, Cout, batch_block, L)
                .transpose(0, 2, 1, 3)
                .reshape(B, Cout, L))
    out = out_flat[:, :, :HpWp].reshape(B, Cout, Hp, Wp)[:, :, 1:H + 1,
                                                         1:W + 1]
    return out


def reference_basic_block(x, w1, g1, be1, m1, v1, w2, g2, be2, m2, v2,
                          eps=1e-5):
    """Pure-JAX f32 NCHW reference (eval-mode BN), for correctness check."""
    def conv(x, w):
        return jax.lax.conv_general_dilated(
            x, w, window_strides=(1, 1), padding="SAME",
            dimension_numbers=("NCHW", "OIHW", "NCHW"))

    def bn(x, g, b, m, v):
        g = g[None, :, None, None]
        b = b[None, :, None, None]
        m = m[None, :, None, None]
        v = v[None, :, None, None]
        return (x - m) / jnp.sqrt(v + eps) * g + b

    out = jax.nn.relu(bn(conv(x, w1), g1, be1, m1, v1))
    out = bn(conv(out, w2), g2, be2, m2, v2)
    return jax.nn.relu(out + x)


if __name__ == "__main__":
    B, C, H, W = 2, 8, 16, 16  # inplanes == planes == 8, stride=1, no downsample
    key = jax.random.PRNGKey(0)
    keys = jax.random.split(key, 9)

    x = jax.random.normal(keys[0], (B, C, H, W), jnp.float32)

    # conv weights (OIHW, bias=False), scaled like kaiming fan-in
    fan_in = C * 3 * 3
    w1 = jax.random.normal(keys[1], (C, C, 3, 3), jnp.float32) * (2.0 / fan_in) ** 0.5
    w2 = jax.random.normal(keys[2], (C, C, 3, 3), jnp.float32) * (2.0 / fan_in) ** 0.5

    # BatchNorm parameters / running stats (deterministic, non-trivial)
    g1 = 1.0 + 0.1 * jax.random.normal(keys[3], (C,), jnp.float32)
    be1 = 0.1 * jax.random.normal(keys[4], (C,), jnp.float32)
    m1 = 0.1 * jax.random.normal(keys[5], (C,), jnp.float32)
    v1 = 1.0 + 0.1 * jax.random.uniform(keys[6], (C,), jnp.float32)

    g2 = 1.0 + 0.1 * jax.random.normal(keys[7], (C,), jnp.float32)
    be2 = 0.1 * jax.random.normal(keys[8], (C,), jnp.float32)
    m2 = jnp.zeros((C,), jnp.float32)
    v2 = jnp.ones((C,), jnp.float32)

    out = basic_block_forward(x, w1, g1, be1, m1, v1, w2, g2, be2, m2, v2)
    out = jax.block_until_ready(out)

    ref = jax.block_until_ready(
        reference_basic_block(x, w1, g1, be1, m1, v1, w2, g2, be2, m2, v2))

    assert out.shape == (B, C, H, W)
    max_err = float(jnp.max(jnp.abs(out - ref)))
    # bf16 MXU operands through two chained K=72 convolutions (per the perf
    # review) => expect ~O(1e-2) deviation from the pure-f32 reference; the
    # tolerance is sized accordingly.
    assert jnp.allclose(out, ref, atol=1e-1, rtol=1e-2), (
        f"max abs diff {max_err}")

    print("KERNEL_OK")
</pallas_src>

<mosaic_0001>
module attributes {stable_mosaic.version = 11 : i64} {
  func.func @basic_block_kernel(%arg0: i32, %arg1: memref<1x8x768xbf16, #tpu.memory_space<vmem>>, %arg2: memref<8x72xbf16, #tpu.memory_space<vmem>>, %arg3: memref<8x1xf32, #tpu.memory_space<vmem>>, %arg4: memref<8x72xbf16, #tpu.memory_space<vmem>>, %arg5: memref<8x1xf32, #tpu.memory_space<vmem>>, %arg6: memref<1x768xf32, #tpu.memory_space<vmem>>, %arg7: memref<1x8x768xf32, #tpu.memory_space<vmem>>, %arg8: memref<72x768xf32, #tpu.memory_space<vmem>>) attributes {dimension_semantics = [#tpu.dimension_semantics<parallel>], iteration_bounds = array<i64: 1>, scalar_prefetch = 0 : i64, scratch_operands = 1 : i64, tpu.core_type = #tpu.core_type<tc>, window_params = [{transform_indices = @transform_0, window_bounds = array<i64: 1, 8, 768>}, {pipeline_mode = #tpu.pipeline_mode<synchronous>, transform_indices = @transform_1, window_bounds = array<i64: 8, 72>}, {pipeline_mode = #tpu.pipeline_mode<synchronous>, transform_indices = @transform_2, window_bounds = array<i64: 8, 1>}, {pipeline_mode = #tpu.pipeline_mode<synchronous>, transform_indices = @transform_3, window_bounds = array<i64: 8, 72>}, {pipeline_mode = #tpu.pipeline_mode<synchronous>, transform_indices = @transform_4, window_bounds = array<i64: 8, 1>}, {pipeline_mode = #tpu.pipeline_mode<synchronous>, transform_indices = @transform_5, window_bounds = array<i64: 1, 768>}, {transform_indices = @transform_6, window_bounds = array<i64: 1, 8, 768>}]} {
    %c0 = arith.constant 0 : index
    %c0_0 = arith.constant 0 : index
    %c0_1 = arith.constant 0 : index
    %0 = vector.load %arg1[%c0, %c0_0, %c0_1] : memref<1x8x768xbf16, #tpu.memory_space<vmem>>, vector<1x8x768xbf16>
    %1 = vector.shape_cast %0 : vector<1x8x768xbf16> to vector<8x768xbf16>
    %2 = arith.extf %1 : vector<8x768xbf16> to vector<8x768xf32>
    %c0_2 = arith.constant 0 : index
    %c0_3 = arith.constant 0 : index
    %3 = vector.load %arg6[%c0_2, %c0_3] : memref<1x768xf32, #tpu.memory_space<vmem>>, vector<1x768xf32>
    %c19_i32 = arith.constant 19 : i32
    %4 = tpu.dynamic_rotate %2 by %c19_i32 dim 1 : vector<8x768xf32>, i32 -> vector<8x768xf32>
    %c0_4 = arith.constant 0 : index
    %c0_5 = arith.constant 0 : index
    %5 = vector.load %arg8[%c0_4, %c0_5] : memref<72x768xf32, #tpu.memory_space<vmem>>, vector<8x768xf32>
    tpu.vector_store %arg8[%c0_4, %c0_5], %4 {strides = array<i32>} : memref<72x768xf32, #tpu.memory_space<vmem>>, vector<8x768xf32>,
    %c18_i32 = arith.constant 18 : i32
    %6 = tpu.dynamic_rotate %2 by %c18_i32 dim 1 : vector<8x768xf32>, i32 -> vector<8x768xf32>
    %c8 = arith.constant 8 : index
    %c0_6 = arith.constant 0 : index
    %7 = vector.load %arg8[%c8, %c0_6] : memref<72x768xf32, #tpu.memory_space<vmem>>, vector<8x768xf32>
    tpu.vector_store %arg8[%c8, %c0_6], %6 {strides = array<i32>} : memref<72x768xf32, #tpu.memory_space<vmem>>, vector<8x768xf32>,
    %c17_i32 = arith.constant 17 : i32
    %8 = tpu.dynamic_rotate %2 by %c17_i32 dim 1 : vector<8x768xf32>, i32 -> vector<8x768xf32>
    %c16 = arith.constant 16 : index
    %c0_7 = arith.constant 0 : index
    %9 = vector.load %arg8[%c16, %c0_7] : memref<72x768xf32, #tpu.memory_space<vmem>>, vector<8x768xf32>
    tpu.vector_store %arg8[%c16, %c0_7], %8 {strides = array<i32>} : memref<72x768xf32, #tpu.memory_space<vmem>>, vector<8x768xf32>,
    %c1_i32 = arith.constant 1 : i32
    %10 = tpu.dynamic_rotate %2 by %c1_i32 dim 1 : vector<8x768xf32>, i32 -> vector<8x768xf32>
    %c24 = arith.constant 24 : index
    %c0_8 = arith.constant 0 : index
    %11 = vector.load %arg8[%c24, %c0_8] : memref<72x768xf32, #tpu.memory_space<vmem>>, vector<8x768xf32>
    tpu.vector_store %arg8[%c24, %c0_8], %10 {strides = array<i32>} : memref<72x768xf32, #tpu.memory_space<vmem>>, vector<8x768xf32>,
    %c0_i32 = arith.constant 0 : i32
    %12 = tpu.dynamic_rotate %2 by %c0_i32 dim 1 : vector<8x768xf32>, i32 -> vector<8x768xf32>
    %c32 = arith.constant 32 : index
    %c0_9 = arith.constant 0 : index
    %13 = vector.load %arg8[%c32, %c0_9] : memref<72x768xf32, #tpu.memory_space<vmem>>, vector<8x768xf32>
    tpu.vector_store %arg8[%c32, %c0_9], %12 {strides = array<i32>} : memref<72x768xf32, #tpu.memory_space<vmem>>, vector<8x768xf32>,
    %c767_i32 = arith.constant 767 : i32
    %14 = tpu.dynamic_rotate %2 by %c767_i32 dim 1 : vector<8x768xf32>, i32 -> vector<8x768xf32>
    %c40 = arith.constant 40 : index
    %c0_10 = arith.constant 0 : index
    %15 = vector.load %arg8[%c40, %c0_10] : memref<72x768xf32, #tpu.memory_space<vmem>>, vector<8x768xf32>
    tpu.vector_store %arg8[%c40, %c0_10], %14 {strides = array<i32>} : memref<72x768xf32, #tpu.memory_space<vmem>>, vector<8x768xf32>,
    %c751_i32 = arith.constant 751 : i32
    %16 = tpu.dynamic_rotate %2 by %c751_i32 dim 1 : vector<8x768xf32>, i32 -> vector<8x768xf32>
    %c48 = arith.constant 48 : index
    %c0_11 = arith.constant 0 : index
    %17 = vector.load %arg8[%c48, %c0_11] : memref<72x768xf32, #tpu.memory_space<vmem>>, vector<8x768xf32>
    tpu.vector_store %arg8[%c48, %c0_11], %16 {strides = array<i32>} : memref<72x768xf32, #tpu.memory_space<vmem>>, vector<8x768xf32>,
    %c750_i32 = arith.constant 750 : i32
    %18 = tpu.dynamic_rotate %2 by %c750_i32 dim 1 : vector<8x768xf32>, i32 -> vector<8x768xf32>
    %c56 = arith.constant 56 : index
    %c0_12 = arith.constant 0 : index
    %19 = vector.load %arg8[%c56, %c0_12] : memref<72x768xf32, #tpu.memory_space<vmem>>, vector<8x768xf32>
    tpu.vector_store %arg8[%c56, %c0_12], %18 {strides = array<i32>} : memref<72x768xf32, #tpu.memory_space<vmem>>, vector<8x768xf32>,
    %c749_i32 = arith.constant 749 : i32
    %20 = tpu.dynamic_rotate %2 by %c749_i32 dim 1 : vector<8x768xf32>, i32 -> vector<8x768xf32>
    %c64 = arith.constant 64 : index
    %c0_13 = arith.constant 0 : index
    %21 = vector.load %arg8[%c64, %c0_13] : memref<72x768xf32, #tpu.memory_space<vmem>>, vector<8x768xf32>
    tpu.vector_store %arg8[%c64, %c0_13], %20 {strides = array<i32>} : memref<72x768xf32, #tpu.memory_space<vmem>>, vector<8x768xf32>,
    %c0_14 = arith.constant 0 : index
    %c0_15 = arith.constant 0 : index
    %22 = vector.load %arg2[%c0_14, %c0_15] : memref<8x72xbf16, #tpu.memory_space<vmem>>, vector<8x72xbf16>
    %c0_16 = arith.constant 0 : index
    %c0_17 = arith.constant 0 : index
    %23 = vector.load %arg8[%c0_16, %c0_17] : memref<72x768xf32, #tpu.memory_space<vmem>>, vector<72x768xf32>
    %24 = arith.truncf %23 : vector<72x768xf32> to vector<72x768xbf16>
    %cst = arith.constant dense<0.000000e+00> : vector<8x768xf32>
    %25 = tpu.matmul %22, %24, %cst {dimension_numbers = #tpu.dot_dimension_numbers<[1], [0], [0], [1], [0, 0, 1, 1], [], []>} : vector<8x72xbf16>, vector<72x768xbf16>, vector<8x768xf32> -> vector<8x768xf32>
    %c0_18 = arith.constant 0 : index
    %c0_19 = arith.constant 0 : index
    %26 = vector.load %arg3[%c0_18, %c0_19] : memref<8x1xf32, #tpu.memory_space<vmem>>, vector<8x1xf32>
    %27 = vector.broadcast %26 : vector<8x1xf32> to vector<8x768xf32>
    %28 = arith.addf %25, %27 : vector<8x768xf32>
    %cst_20 = arith.constant 0.000000e+00 : f32
    %29 = vector.broadcast %cst_20 : f32 to vector<8x768xf32>
    %30 = arith.maximumf %28, %29 : vector<8x768xf32>
    %31 = vector.broadcast %3 : vector<1x768xf32> to vector<8x768xf32>
    %32 = arith.mulf %30, %31 : vector<8x768xf32>
    %c19_i32_21 = arith.constant 19 : i32
    %33 = tpu.dynamic_rotate %32 by %c19_i32_21 dim 1 : vector<8x768xf32>, i32 -> vector<8x768xf32>
    %c0_22 = arith.constant 0 : index
    %c0_23 = arith.constant 0 : index
    %34 = vector.load %arg8[%c0_22, %c0_23] : memref<72x768xf32, #tpu.memory_space<vmem>>, vector<8x768xf32>
    tpu.vector_store %arg8[%c0_22, %c0_23], %33 {strides = array<i32>} : memref<72x768xf32, #tpu.memory_space<vmem>>, vector<8x768xf32>,
    %c18_i32_24 = arith.constant 18 : i32
    %35 = tpu.dynamic_rotate %32 by %c18_i32_24 dim 1 : vector<8x768xf32>, i32 -> vector<8x768xf32>
    %c8_25 = arith.constant 8 : index
    %c0_26 = arith.constant 0 : index
    %36 = vector.load %arg8[%c8_25, %c0_26] : memref<72x768xf32, #tpu.memory_space<vmem>>, vector<8x768xf32>
    tpu.vector_store %arg8[%c8_25, %c0_26], %35 {strides = array<i32>} : memref<72x768xf32, #tpu.memory_space<vmem>>, vector<8x768xf32>,
    %c17_i32_27 = arith.constant 17 : i32
    %37 = tpu.dynamic_rotate %32 by %c17_i32_27 dim 1 : vector<8x768xf32>, i32 -> vector<8x768xf32>
    %c16_28 = arith.constant 16 : index
    %c0_29 = arith.constant 0 : index
    %38 = vector.load %arg8[%c16_28, %c0_29] : memref<72x768xf32, #tpu.memory_space<vmem>>, vector<8x768xf32>
    tpu.vector_store %arg8[%c16_28, %c0_29], %37 {strides = array<i32>} : memref<72x768xf32, #tpu.memory_space<vmem>>, vector<8x768xf32>,
    %c1_i32_30 = arith.constant 1 : i32
    %39 = tpu.dynamic_rotate %32 by %c1_i32_30 dim 1 : vector<8x768xf32>, i32 -> vector<8x768xf32>
    %c24_31 = arith.constant 24 : index
    %c0_32 = arith.constant 0 : index
    %40 = vector.load %arg8[%c24_31, %c0_32] : memref<72x768xf32, #tpu.memory_space<vmem>>, vector<8x768xf32>
    tpu.vector_store %arg8[%c24_31, %c0_32], %39 {strides = array<i32>} : memref<72x768xf32, #tpu.memory_space<vmem>>, vector<8x768xf32>,
    %c0_i32_33 = arith.constant 0 : i32
    %41 = tpu.dynamic_rotate %32 by %c0_i32_33 dim 1 : vector<8x768xf32>, i32 -> vector<8x768xf32>
    %c32_34 = arith.constant 32 : index
    %c0_35 = arith.constant 0 : index
    %42 = vector.load %arg8[%c32_34, %c0_35] : memref<72x768xf32, #tpu.memory_space<vmem>>, vector<8x768xf32>
    tpu.vector_store %arg8[%c32_34, %c0_35], %41 {strides = array<i32>} : memref<72x768xf32, #tpu.memory_space<vmem>>, vector<8x768xf32>,
    %c767_i32_36 = arith.constant 767 : i32
    %43 = tpu.dynamic_rotate %32 by %c767_i32_36 dim 1 : vector<8x768xf32>, i32 -> vector<8x768xf32>
    %c40_37 = arith.constant 40 : index
    %c0_38 = arith.constant 0 : index
    %44 = vector.load %arg8[%c40_37, %c0_38] : memref<72x768xf32, #tpu.memory_space<vmem>>, vector<8x768xf32>
    tpu.vector_store %arg8[%c40_37, %c0_38], %43 {strides = array<i32>} : memref<72x768xf32, #tpu.memory_space<vmem>>, vector<8x768xf32>,
    %c751_i32_39 = arith.constant 751 : i32
    %45 = tpu.dynamic_rotate %32 by %c751_i32_39 dim 1 : vector<8x768xf32>, i32 -> vector<8x768xf32>
    %c48_40 = arith.constant 48 : index
    %c0_41 = arith.constant 0 : index
    %46 = vector.load %arg8[%c48_40, %c0_41] : memref<72x768xf32, #tpu.memory_space<vmem>>, vector<8x768xf32>
    tpu.vector_store %arg8[%c48_40, %c0_41], %45 {strides = array<i32>} : memref<72x768xf32, #tpu.memory_space<vmem>>, vector<8x768xf32>,
    %c750_i32_42 = arith.constant 750 : i32
    %47 = tpu.dynamic_rotate %32 by %c750_i32_42 dim 1 : vector<8x768xf32>, i32 -> vector<8x768xf32>
    %c56_43 = arith.constant 56 : index
    %c0_44 = arith.constant 0 : index
    %48 = vector.load %arg8[%c56_43, %c0_44] : memref<72x768xf32, #tpu.memory_space<vmem>>, vector<8x768xf32>
    tpu.vector_store %arg8[%c56_43, %c0_44], %47 {strides = array<i32>} : memref<72x768xf32, #tpu.memory_space<vmem>>, vector<8x768xf32>,
    %c749_i32_45 = arith.constant 749 : i32
    %49 = tpu.dynamic_rotate %32 by %c749_i32_45 dim 1 : vector<8x768xf32>, i32 -> vector<8x768xf32>
    %c64_46 = arith.constant 64 : index
    %c0_47 = arith.constant 0 : index
    %50 = vector.load %arg8[%c64_46, %c0_47] : memref<72x768xf32, #tpu.memory_space<vmem>>, vector<8x768xf32>
    tpu.vector_store %arg8[%c64_46, %c0_47], %49 {strides = array<i32>} : memref<72x768xf32, #tpu.memory_space<vmem>>, vector<8x768xf32>,
    %c0_48 = arith.constant 0 : index
    %c0_49 = arith.constant 0 : index
    %51 = vector.load %arg4[%c0_48, %c0_49] : memref<8x72xbf16, #tpu.memory_space<vmem>>, vector<8x72xbf16>
    %c0_50 = arith.constant 0 : index
    %c0_51 = arith.constant 0 : index
    %52 = vector.load %arg8[%c0_50, %c0_51] : memref<72x768xf32, #tpu.memory_space<vmem>>, vector<72x768xf32>
    %53 = arith.truncf %52 : vector<72x768xf32> to vector<72x768xbf16>
    %cst_52 = arith.constant dense<0.000000e+00> : vector<8x768xf32>
    %54 = tpu.matmul %51, %53, %cst_52 {dimension_numbers = #tpu.dot_dimension_numbers<[1], [0], [0], [1], [0, 0, 1, 1], [], []>} : vector<8x72xbf16>, vector<72x768xbf16>, vector<8x768xf32> -> vector<8x768xf32>
    %c0_53 = arith.constant 0 : index
    %c0_54 = arith.constant 0 : index
    %55 = vector.load %arg5[%c0_53, %c0_54] : memref<8x1xf32, #tpu.memory_space<vmem>>, vector<8x1xf32>
    %56 = vector.broadcast %55 : vector<8x1xf32> to vector<8x768xf32>
    %57 = arith.addf %54, %56 : vector<8x768xf32>
    %58 = arith.addf %57, %2 : vector<8x768xf32>
    %cst_55 = arith.constant 0.000000e+00 : f32
    %59 = vector.broadcast %cst_55 : f32 to vector<8x768xf32>
    %60 = arith.maximumf %58, %59 : vector<8x768xf32>
    %c0_56 = arith.constant 0 : index
    %c0_57 = arith.constant 0 : index
    %c0_58 = arith.constant 0 : index
    %61 = vector.load %arg7[%c0_56, %c0_57, %c0_58] : memref<1x8x768xf32, #tpu.memory_space<vmem>>, vector<1x8x768xf32>
    %62 = vector.shape_cast %61 : vector<1x8x768xf32> to vector<8x768xf32>
    %63 = vector.shape_cast %60 : vector<8x768xf32> to vector<1x8x768xf32>
    tpu.vector_store %arg7[%c0_56, %c0_57, %c0_58], %63 {strides = array<i32>} : memref<1x8x768xf32, #tpu.memory_space<vmem>>, vector<1x8x768xf32>,
    return
  }
  func.func @transform_0(%arg0: i32) -> (i32, i32, i32) {
    %c0_i32 = arith.constant 0 : i32
    %c0_i32_0 = arith.constant 0 : i32
    %c0_i32_1 = arith.constant 0 : i32
    return %arg0, %c0_i32, %c0_i32_0 : i32, i32, i32
  }
  func.func @transform_1(%arg0: i32) -> (i32, i32) {
    %c0_i32 = arith.constant 0 : i32
    %c0_i32_0 = arith.constant 0 : i32
    %c0_i32_1 = arith.constant 0 : i32
    return %c0_i32, %c0_i32_0 : i32, i32
  }
  func.func @transform_2(%arg0: i32) -> (i32, i32) {
    %c0_i32 = arith.constant 0 : i32
    %c0_i32_0 = arith.constant 0 : i32
    %c0_i32_1 = arith.constant 0 : i32
    return %c0_i32, %c0_i32_0 : i32, i32
  }
  func.func @transform_3(%arg0: i32) -> (i32, i32) {
    %c0_i32 = arith.constant 0 : i32
    %c0_i32_0 = arith.constant 0 : i32
    %c0_i32_1 = arith.constant 0 : i32
    return %c0_i32, %c0_i32_0 : i32, i32
  }
  func.func @transform_4(%arg0: i32) -> (i32, i32) {
    %c0_i32 = arith.constant 0 : i32
    %c0_i32_0 = arith.constant 0 : i32
    %c0_i32_1 = arith.constant 0 : i32
    return %c0_i32, %c0_i32_0 : i32, i32
  }
  func.func @transform_5(%arg0: i32) -> (i32, i32) {
    %c0_i32 = arith.constant 0 : i32
    %c0_i32_0 = arith.constant 0 : i32
    %c0_i32_1 = arith.constant 0 : i32
    return %c0_i32, %c0_i32_0 : i32, i32
  }
  func.func @transform_6(%arg0: i32) -> (i32, i32, i32) {
    %c0_i32 = arith.constant 0 : i32
    %c0_i32_0 = arith.constant 0 : i32
    %c0_i32_1 = arith.constant 0 : i32
    return %arg0, %c0_i32, %c0_i32_0 : i32, i32, i32
  }
}

</mosaic_0001>

<bundles_post_ra>
// kernel: tpu_custom_call.1
= control target key start
LH: loop header
LB: loop body
LE: loop exit
PB: predicated region body
PF: predicated region fallthrough
CT: control target
= control target key end

     0   :  { %11 = vsyncpa [#allocation4], 0  ;;  %s1939_s0 = inlined_call_operand.hbm [shape: bf16[1,8,768], index: 0, kind: input, shape index: {}]   ;;  %s1940_s1 = inlined_call_operand.vmem [shape: bf16[8,72], index: 1, kind: input, shape index: {}]   ;;  %s1941_s2 = inlined_call_operand.vmem [shape: f32[8,1], index: 2, kind: input, shape index: {}]   ;;  %s1942_s3 = inlined_call_operand.vmem [shape: bf16[8,72], index: 3, kind: input, shape index: {}]   ;;  %s1943_s4 = inlined_call_operand.vmem [shape: f32[8,1], index: 4, kind: input, shape index: {}]   ;;  %s1944_s5 = inlined_call_operand.vmem [shape: f32[1,768], index: 5, kind: input, shape index: {}]   ;;  %s1945_s6 = inlined_call_operand.hbm [shape: f32[1,8,768], index: 6, kind: output, shape index: {}]  }
   0x1   :  { %12 = vsyncpa [#allocation5], 0  ;;  %s1269_s21 = smov [#allocation3]   ;;  %s1221_s25 = scalar_lea.hbm %s1939_s0, 384 }
   0x2   :  { %s19_s22 = sshll.u32 %s1269_s21, 4  ;;  %p1222_p0 = scmp.ne.s32.totalorder %s1939_s0, %s1221_s25  ;;  %s20_s22 = int_to_ptr.vmem [resolvable:$true] %s19_s22 }
   0x3   :  { %p1225_p1 = scmp.lt.u32.totalorder %s1221_s25, %s1939_s0 }
   0x5   :  { %p1227_p2 = pnand %p1225_p1, %p1222_p0 }
   0x7   :  { %1230 = shalt.err (!%p1227_p2)
}
   0x8   :  { %s1231_s30 = scalar_lea.vmem %s20_s22, 384  ;;  %p1236_p4 = scmp.lt.s32.totalorder %s20_s22, %s20_s22 }
   0x9   :  { %p1232_p3 = scmp.ne.s32.totalorder %s20_s22, %s1231_s30  ;;  %p1237_p5 = scmp.lt.s32.totalorder %s1231_s30, %s1231_s30 }
   0xb   :  { %p1238_p6 = por %p1237_p5, %p1236_p4 }
   0xd   :  { %p1239_p7 = pnand %p1238_p6, %p1232_p3 }
   0xf   :  { %1242 = shalt.err (!%p1239_p7)
}
  0x10   :  { %22 = dma.hbm_to_vmem [thread:$0]  %s1939_s0, 384, %s20_s22, [#allocation4]  }
  0x11   :  { %1265 = dma.done.wait [#allocation4], 384  }
  0x12   :  { %1266 = vsyncadd [#allocation4], 4294966912  ;;  %v39_v0 = vld [vmem:[#allocation3 + $0x10] sm:$0xff]  ;;  %v37_v1 = vld [vmem:[#allocation3] sm:$0xff]  ;;  %s1270_s9 = smov 19   ;;  %s1271_s0 = smov 18   ;;  %v59_v16 = vlaneseq }
  0x13   :  { %v1327_v2 = vunpack.c.l.bf16 %v39_v0  ;;  %v1329_v3 = vunpack.c.h.bf16 %v39_v0  ;;  %v1331_v4 = vunpack.c.l.bf16 %v37_v1  ;;  %v1333_v5 = vunpack.c.h.bf16 %v37_v1  ;;  %v38_v8 = vld [vmem:[#allocation3 + $0x8] sm:$0xff]  ;;  %s1272_s10 = smov 1   ;;  %s1273_s11 = smov 17   ;;  %v340_v15 = vld [vmem:[%s1941_s2] sm:$0xff] }
  0x14   :  { %v1345_v9 = vunpack.c.l.bf16 %v38_v8  ;;  %s1274_s12 = smov 127   ;;  %s1275_s13 = smov 110   ;;  %v1360_v11 = vunpack.c.h.bf16 %v38_v8  ;;  %v1277_v12 = vmov 0   ;;  %v1397_v19 = vand.u32 127, %v59_v16 }
  0x15   :  { %v1034_v6 = vpack.i.bf16 %v1327_v2, %v1329_v3  ;;  %v1024_v7 = vpack.i.bf16 %v1333_v5, %v1331_v4  ;;  %s1276_s14 = smov 111   ;;  %401 = vmatprep.mubr.bf16.mxu0 %v1277_v12  ;;  %442 = vmatprep.mubr.bf16.mxu1 %v1277_v12  ;;  %s1278_s15 = smov 109   ;;  %v1119_v14 = vpack.i.bf16 %v1329_v3, %v1327_v2  ;;  %vm350_vm8 = vcmask 1043456  }
  0x16   :  { %v1064_v10 = vpack.i.bf16 %v1345_v9, %v1333_v5  ;;  %1124 = vset.pattern.permute.xlu0 %v1277_v12  ;;  %1220 = vset.pattern.permute.xlu1 %v1277_v12  ;;  %v1089_v13 = vpack.i.bf16 %v1345_v9, %v1360_v11  ;;  %vm61_vm0 = vcmp.lt.s32.totalorder %v1397_v19, 19  ;;  %vm86_vm1 = vcmp.lt.s32.totalorder %v1397_v19, 18 }
  0x17   :  { %1035 = vrot.lane.b32.xlu1 %v1034_v6, %s1270_s9  ;;  %1025 = vrot.lane.b32.xlu0 %v1024_v7, %s1270_s9  ;;  %vm111_vm2 = vcmp.lt.s32.totalorder %v1397_v19, 17  ;;  %vm136_vm3 = vcmp.lt.s32.totalorder %v1397_v19, 1  ;;  %vm167_vm4 = vcmp.lt.s32.totalorder %v1397_v19, 127  ;;  %vm217_vm5 = vcmp.lt.s32.totalorder %v1397_v19, 110 }
  0x18   :  { %vm192_vm6 = vcmp.lt.s32.totalorder %v1397_v19, 111  ;;  %vm242_vm7 = vcmp.lt.s32.totalorder %v1397_v19, 109  ;;  %vm346_vm9 = vcmask 588800  }
  0x1b   :  { %1040 = vrot.lane.b32.xlu1 %v1034_v6, %s1271_s0  ;;  %1030 = vrot.lane.b32.xlu0 %v1024_v7, %s1271_s0 }
  0x1f   :  { %1050 = vrot.lane.b32.xlu1 %v1024_v7, %s1272_s10  ;;  %1045 = vrot.lane.b32.xlu0 %v1024_v7, %s1273_s11 }
  0x23   :  { %1060 = vrot.lane.b32.xlu1 %v1034_v6, %s1272_s10  ;;  %1055 = vrot.lane.b32.xlu0 %v1034_v6, %s1273_s11 }
  0x27   :  { %155 = vrot.lane.b32.xlu1 %v1331_v4, %s1274_s12  ;;  %1065 = vrot.lane.b32.xlu0 %v1064_v10, %s1274_s12 }
  0x2b   :  { %1075 = vrot.lane.b32.xlu1 %v1064_v10, %s1275_s13  ;;  %1070 = vrot.lane.b32.xlu0 %v1064_v10, %s1276_s14 }
  0x2f   :  { %205 = vrot.lane.b32.xlu1 %v1331_v4, %s1275_s13  ;;  %180 = vrot.lane.b32.xlu0 %v1331_v4, %s1276_s14 }
  0x33   :  { %234 = vrot.lane.b32.xlu1 %v1345_v9, %s1278_s15  ;;  %1080 = vrot.lane.b32.xlu0 %v1024_v7, %s1278_s15 }
  0x37   :  { %1090 = vrot.lane.b32.xlu1 %v1089_v13, %s1271_s0  ;;  %1085 = vrot.lane.b32.xlu0 %v1089_v13, %s1270_s9 }
  0x3b   :  { %1100 = vrot.lane.b32.xlu1 %v1089_v13, %s1272_s10  ;;  %1095 = vrot.lane.b32.xlu0 %v1089_v13, %s1273_s11 }
  0x3f   :  { %1110 = vrot.lane.b32.xlu1 %v1034_v6, %s1276_s14  ;;  %1105 = vrot.lane.b32.xlu0 %v1034_v6, %s1274_s12 }
  0x43   :  { %161 = vrot.lane.b32.xlu1 %v1360_v11, %s1274_s12  ;;  %1115 = vrot.lane.b32.xlu0 %v1034_v6, %s1275_s13 }
  0x47   :  { %186 = vrot.lane.b32.xlu1 %v1360_v11, %s1276_s14  ;;  %1120 = vrot.lane.b32.xlu0 %v1119_v14, %s1278_s15 }
  0x4b   :  { %236 = vrot.lane.b32.xlu1 %v1360_v11, %s1278_s15  ;;  %211 = vrot.lane.b32.xlu0 %v1360_v11, %s1275_s13 }
  0x4f   :  { %343 = vperm.xlu0 %1124, %v340_v15  }
  0x89   :  { %v1392_v17 = vpop.permute.xlu1 %1035  ;;  %v1394_v18 = vpop.permute.xlu0 %1025 }
  0x8a   :  { %v1037_v20 = vunpack.i.l.bf16 %v1392_v17  ;;  %v1028_v21 = vunpack.i.h.bf16 %v1394_v18  ;;  %v1027_v22 = vunpack.i.l.bf16 %v1394_v18  ;;  %v1038_v15 = vunpack.i.h.bf16 %v1392_v17 }
  0x8c   :  { %v66_v28 = vsel %vm61_vm0, %v1027_v22, %v1028_v21  ;;  %v67_v30 = vsel %vm61_vm0, %v1037_v20, %v1027_v22 }
  0x8d   :  { %v1402_v23 = vpop.permute.xlu1 %1040  ;;  %v1404_v24 = vpop.permute.xlu0 %1030 }
  0x8e   :  { %v1042_v25 = vunpack.i.l.bf16 %v1402_v23  ;;  %v1033_v26 = vunpack.i.h.bf16 %v1404_v24  ;;  %v1032_v27 = vunpack.i.l.bf16 %v1404_v24  ;;  %v1043_v22 = vunpack.i.h.bf16 %v1402_v23 }
  0x90   :  { %v91_v29 = vsel %vm86_vm1, %v1032_v27, %v1033_v26  ;;  %v92_v31 = vsel %vm86_vm1, %v1042_v25, %v1032_v27 }
  0x91   :  { %v1427_v32 = vpop.permute.xlu1 %1050  ;;  %v1429_v33 = vpop.permute.xlu0 %1045  ;;  %v311_v34 = vpack.c.bf16 %v91_v29, %v66_v28  ;;  %v310_v35 = vpack.c.bf16 %v92_v31, %v67_v30 }
  0x92   :  { %v1053_v36 = vunpack.i.h.bf16 %v1427_v32  ;;  %v1052_v37 = vunpack.i.l.bf16 %v1427_v32  ;;  %v1048_v38 = vunpack.i.h.bf16 %v1429_v33  ;;  %v1047_v39 = vunpack.i.l.bf16 %v1429_v33 }
  0x93   :  { %369 = vmatprep.subr.bf16.mxu0 %v311_v34 }
  0x94   :  { %370 = vmatpush1.bf16.msra.mxu0 %v310_v35  ;;  %v116_v40 = vsel %vm111_vm2, %v1047_v39, %v1048_v38  ;;  %v141_v41 = vsel %vm136_vm3, %v1052_v37, %v1053_v36 }
  0x95   :  { %v1445_v42 = vpop.permute.xlu1 %1060  ;;  %v1447_v43 = vpop.permute.xlu0 %1055  ;;  %v317_v44 = vpack.c.bf16 %v141_v41, %v116_v40  ;;  %v87_v40 = vsel %vm86_vm1, %v1043_v22, %v1042_v25 }
  0x96   :  { %v1062_v45 = vunpack.i.l.bf16 %v1445_v42  ;;  %v1057_v46 = vunpack.i.l.bf16 %v1447_v43  ;;  %v1063_v31 = vunpack.i.h.bf16 %v1445_v42  ;;  %v1058_v34 = vunpack.i.h.bf16 %v1447_v43  ;;  %v1546_v42 = vld [vmem:[%s1940_s1] sm:$0xf] }
  0x97   :  { %371 = vmatprep.subr.bf16.mxu0 %v317_v44 }
  0x98   :  { %v117_v47 = vsel %vm111_vm2, %v1057_v46, %v1047_v39  ;;  %v142_v48 = vsel %vm136_vm3, %v1062_v45, %v1052_v37  ;;  %v62_v39 = vsel %vm61_vm0, %v1038_v15, %v1037_v20  ;;  %v112_v20 = vsel %vm111_vm2, %v1058_v34, %v1057_v46 }
  0x99   :  { %v1457_v49 = vpop.permute.xlu1 %155  ;;  %v1459_v50 = vpop.permute.xlu0 %1065  ;;  %v316_v51 = vpack.c.bf16 %v142_v48, %v117_v47  ;;  %v137_v23 = vsel %vm136_vm3, %v1063_v31, %v1062_v45 }
  0x9a   :  { %v1068_v52 = vunpack.i.h.bf16 %v1459_v50  ;;  %v1067_v53 = vunpack.i.l.bf16 %v1459_v50 }
  0x9b   :  { %372 = vmatpush1.bf16.msra.mxu0 %v316_v51 }
  0x9c   :  { %v171_v54 = vsel %vm167_vm4, %v1067_v53, %v1068_v52  ;;  %v172_v55 = vsel %vm167_vm4, %v1457_v49, %v1067_v53 }
  0x9d   :  { %v1471_v56 = vpop.permute.xlu1 %1075  ;;  %v1473_v57 = vpop.permute.xlu0 %1070  ;;  %v323_v58 = vpack.c.bf16 %v171_v54, %v1333_v5  ;;  %v322_v59 = vpack.c.bf16 %v172_v55, %v1331_v4  ;;  %v315_v55 = vpack.c.bf16 %v87_v40, %v62_v39 }
  0x9e   :  { %v1078_v60 = vunpack.i.h.bf16 %v1471_v56  ;;  %v1077_v61 = vunpack.i.l.bf16 %v1471_v56  ;;  %v1073_v62 = vunpack.i.h.bf16 %v1473_v57  ;;  %v1072_v63 = vunpack.i.l.bf16 %v1473_v57 }
  0x9f   :  { %373 = vmatprep.subr.bf16.mxu0 %v323_v58 }
  0xa0   :  { %374 = vmatpush1.bf16.msra.mxu0 %v322_v59  ;;  %v196_v0 = vsel %vm192_vm6, %v1072_v63, %v1073_v62  ;;  %v221_v1 = vsel %vm217_vm5, %v1077_v61, %v1078_v60 }
  0xa1   :  { %v1491_v6 = vpop.permute.xlu1 %205  ;;  %v1493_v7 = vpop.permute.xlu0 %180  ;;  %v329_v8 = vpack.c.bf16 %v221_v1, %v196_v0 }
  0xa2   :  { %v222_v10 = vsel %vm217_vm5, %v1491_v6, %v1077_v61  ;;  %v197_v13 = vsel %vm192_vm6, %v1493_v7, %v1072_v63 }
  0xa3   :  { %v328_v14 = vpack.c.bf16 %v222_v10, %v197_v13  ;;  %375 = vmatprep.subr.bf16.mxu0 %v329_v8 }
  0xa5   :  { %v1503_v27 = vpop.permute.xlu1 %234  ;;  %v1506_v28 = vpop.permute.xlu0 %1080  ;;  %376 = vmatpush1.bf16.msra.mxu0 %v328_v14 }
  0xa6   :  { %v1083_v29 = vunpack.i.h.bf16 %v1506_v28  ;;  %v1082_v30 = vunpack.i.l.bf16 %v1506_v28 }
  0xa8   :  { %v246_v35 = vsel %vm242_vm7, %v1083_v29, %v1503_v27  ;;  %v247_v37 = vsel %vm242_vm7, %v1082_v30, %v1083_v29  ;;  %v321_v29 = vpack.c.bf16 %v137_v23, %v112_v20 }
  0xa9   :  { %v335_v41 = vpack.c.bf16 %v246_v35, %v246_v35  ;;  %v1091_v43 = vpop.permute.xlu1 %1090  ;;  %v1086_v44 = vpop.permute.xlu0 %1085  ;;  %v334_v47 = vpack.c.bf16 %v247_v37, %v247_v37 }
  0xaa   :  { %v1093_v48 = vunpack.i.h.bf16 %v1091_v43  ;;  %v1092_v51 = vunpack.i.l.bf16 %v1091_v43  ;;  %v1088_v53 = vunpack.i.h.bf16 %v1086_v44  ;;  %v1087_v54 = vunpack.i.l.bf16 %v1086_v44 }
  0xab   :  { %1001 = vmatprep.subr.msk.bf16.mxu0 %vm350_vm8, %v335_v41  ;;  %v352_v17 = vsel %vm350_vm8, %v334_v47, 0 }
  0xac   :  { %v88_v25 = vsel %vm86_vm1, %v1092_v51, %v1043_v22  ;;  %v63_v58 = vsel %vm61_vm0, %v1087_v54, %v1038_v15  ;;  %378 = vmatpush1.bf16.msra.mxu0 %v352_v17  ;;  %v64_v59 = vsel %vm61_vm0, %v1088_v53, %v1087_v54  ;;  %v89_v61 = vsel %vm86_vm1, %v1093_v48, %v1092_v51 }
  0xad   :  { %v314_v46 = vpack.c.bf16 %v88_v25, %v63_v58  ;;  %v1101_v45 = vpop.permute.xlu1 %1100  ;;  %v1096_v63 = vpop.permute.xlu0 %1095  ;;  %451 = vmatprep.subr.bf16.mxu0 %v315_v55  ;;  %v313_v0 = vpack.c.bf16 %v89_v61, %v64_v59  ;;  %v65_v1 = vsel %vm61_vm0, %v1028_v21, %v1088_v53  ;;  %v90_v8 = vsel %vm86_vm1, %v1033_v26, %v1093_v48 }
  0xae   :  { %v1103_v10 = vunpack.i.h.bf16 %v1101_v45  ;;  %v1102_v13 = vunpack.i.l.bf16 %v1101_v45  ;;  %v1098_v14 = vunpack.i.h.bf16 %v1096_v63  ;;  %v1097_v15 = vunpack.i.l.bf16 %v1096_v63 }
  0xaf   :  { %410 = vmatprep.subr.bf16.mxu1 %v313_v0  ;;  %1002 = vmatmul.mubr.msk.bf16.vlgmr.msra.gmra.mrb[0].mxu0 %vm346_vm9, %v1546_v42  ;;  %v312_v22 = vpack.c.bf16 %v90_v8, %v65_v1 }
  0xb0   :  { %v138_v18 = vsel %vm136_vm3, %v1102_v13, %v1063_v31  ;;  %v113_v21 = vsel %vm111_vm2, %v1097_v15, %v1058_v34  ;;  %452 = vmatpush1.bf16.msra.mxu0 %v314_v46  ;;  %v114_v24 = vsel %vm111_vm2, %v1098_v14, %v1097_v15  ;;  %v139_v26 = vsel %vm136_vm3, %v1103_v10, %v1102_v13 }
  0xb1   :  { %v320_v35 = vpack.c.bf16 %v138_v18, %v113_v21  ;;  %411 = vmatpush1.bf16.msra.mxu1 %v312_v22  ;;  %v1111_v37 = vpop.permute.xlu1 %1110  ;;  %v1106_v39 = vpop.permute.xlu0 %1105  ;;  %453 = vmatprep.subr.bf16.mxu0 %v321_v29  ;;  %v319_v40 = vpack.c.bf16 %v139_v26, %v114_v24  ;;  %v115_v31 = vsel %vm111_vm2, %v1048_v38, %v1098_v14 }
  0xb2   :  { %v1113_v41 = vunpack.i.h.bf16 %v1111_v37  ;;  %v1108_v34 = vunpack.i.h.bf16 %v1106_v39  ;;  %v1107_v43 = vunpack.i.l.bf16 %v1106_v39  ;;  %483 = vmatprep.mubr.bf16.mxu0 %v1277_v12  ;;  %v1112_v44 = vunpack.i.l.bf16 %v1111_v37 }
  0xb3   :  { %412 = vmatprep.subr.bf16.mxu1 %v319_v40  ;;  %v140_v47 = vsel %vm136_vm3, %v1053_v36, %v1103_v10 }
  0xb4   :  { %v168_v48 = vsel %vm167_vm4, %v1108_v34, %v1107_v43  ;;  %v318_v51 = vpack.c.bf16 %v140_v47, %v115_v31  ;;  %454 = vmatpush1.bf16.msra.mxu0 %v320_v35  ;;  %v173_v33 = vsel %vm167_vm4, %v1107_v43, %v1457_v49  ;;  %v193_v38 = vsel %vm192_vm6, %v1113_v41, %v1112_v44  ;;  %v46_v35 = vld [vmem:[%s1944_s5] sm:$0x3f] }
  0xb5   :  { %v326_v53 = vpack.c.bf16 %v168_v48, %v1327_v2  ;;  %v162_v54 = vpop.permute.xlu1 %161  ;;  %v1116_v17 = vpop.permute.xlu0 %1115  ;;  %v327_v32 = vpack.c.bf16 %v173_v33, %v1329_v3  ;;  %v198_v59 = vsel %vm192_vm6, %v1112_v44, %v1493_v7 }
  0xb6   :  { %413 = vmatpush1.bf16.msra.mxu1 %v318_v51  ;;  %v169_v36 = vsel %vm167_vm4, %v162_v54, %v1108_v34  ;;  %v170_v55 = vsel %vm167_vm4, %v1068_v52, %v162_v54  ;;  %v1118_v20 = vunpack.i.h.bf16 %v1116_v17  ;;  %v1117_v49 = vunpack.i.l.bf16 %v1116_v17 }
  0xb7   :  { %v324_v23 = vpack.c.bf16 %v170_v55, %v1345_v9  ;;  %v325_v25 = vpack.c.bf16 %v169_v36, %v1360_v11  ;;  %455 = vmatprep.subr.bf16.mxu0 %v327_v32 }
  0xb8   :  { %v218_v58 = vsel %vm217_vm5, %v1118_v20, %v1117_v49  ;;  %456 = vmatpush1.bf16.msra.mxu0 %v326_v53  ;;  %v223_v50 = vsel %vm217_vm5, %v1117_v49, %v1491_v6 }
  0xb9   :  { %v332_v52 = vpack.c.bf16 %v218_v58, %v193_v38  ;;  %v187_v61 = vpop.permute.xlu1 %186  ;;  %v1121_v46 = vpop.permute.xlu0 %1120  ;;  %414 = vmatprep.subr.bf16.mxu1 %v325_v25  ;;  %v333_v45 = vpack.c.bf16 %v223_v50, %v198_v59 }
  0xba   :  { %v1123_v63 = vunpack.i.h.bf16 %v1121_v46  ;;  %v1122_v0 = vunpack.i.l.bf16 %v1121_v46  ;;  %415 = vmatpush1.bf16.msra.mxu1 %v324_v23  ;;  %v194_v6 = vsel %vm192_vm6, %v187_v61, %v1113_v41  ;;  %v195_v8 = vsel %vm192_vm6, %v1073_v62, %v187_v61 }
  0xbb   :  { %457 = vmatprep.subr.bf16.mxu0 %v333_v45 }
  0xbc   :  { %v248_v1 = vsel %vm242_vm7, %v1123_v63, %v1082_v30  ;;  %458 = vmatpush1.bf16.msra.mxu0 %v332_v52  ;;  %v243_v7 = vsel %vm242_vm7, %v1122_v0, %v1123_v63 }
  0xbd   :  { %v339_v10 = vpack.c.bf16 %v248_v1, %v248_v1  ;;  %v237_v13 = vpop.permute.xlu1 %236  ;;  %v212_v14 = vpop.permute.xlu0 %211  ;;  %v338_v15 = vpack.c.bf16 %v243_v7, %v243_v7 }
  0xbe   :  { %v244_v28 = vsel %vm242_vm7, %v237_v13, %v1122_v0  ;;  %v245_v30 = vsel %vm242_vm7, %v1503_v27, %v237_v13  ;;  %v219_v22 = vsel %vm217_vm5, %v212_v14, %v1118_v20  ;;  %v220_v57 = vsel %vm217_vm5, %v1078_v60, %v212_v14 }
  0xbf   :  { %v330_v62 = vpack.c.bf16 %v220_v57, %v195_v8  ;;  %v331_v29 = vpack.c.bf16 %v219_v22, %v194_v6  ;;  %1005 = vmatprep.subr.msk.bf16.mxu0 %vm350_vm8, %v339_v10  ;;  %v364_v18 = vsel %vm350_vm8, %v338_v15, 0  ;;  %v336_v21 = vpack.c.bf16 %v245_v30, %v245_v30 }
  0xc0   :  { %v337_v24 = vpack.c.bf16 %v244_v28, %v244_v28  ;;  %460 = vmatpush1.bf16.msra.mxu0 %v364_v18  ;;  %v500_v60 = vshrl.u32 %v59_v16, 7 }
  0xc1   :  { %416 = vmatprep.subr.bf16.mxu1 %v331_v29  ;;  %v358_v56 = vsel %vm350_vm8, %v336_v21, 0 }
  0xc2   :  { %417 = vmatpush1.bf16.msra.mxu1 %v330_v62  ;;  %v501_v27 = vsub.s32 0, %v500_v60  ;;  %v505_v37 = vsub.s32 1, %v500_v60  ;;  %v509_v54 = vsub.s32 2, %v500_v60  ;;  %v521_v20 = vsub.s32 5, %v500_v60  ;;  %v818_v62 = vld [vmem:[%s1943_s4] sm:$0xff] }
  0xc3   :  { %1003 = vmatprep.subr.msk.bf16.mxu1 %vm350_vm8, %v337_v24  ;;  %1006 = vmatmul.mubr.msk.bf16.vlgmr.msra.gmra.mrb[4].mxu0 %vm346_vm9, %v1546_v42  ;;  %v513_v7 = vsub.s32 3, %v500_v60  ;;  %v517_v8 = vsub.s32 4, %v500_v60 }
  0xc4   :  { %918 = vmatprep.mubr.bf16.mxu0 %v1277_v12  ;;  %v502_v31 = vrot.slane %v46_v35, %v501_v27  ;;  %v506_v43 = vrot.slane %v46_v35, %v505_v37  ;;  %v510_v23 = vrot.slane %v46_v35, %v509_v54  ;;  %v522_v61 = vrot.slane %v46_v35, %v521_v20 }
  0xc5   :  { %v514_v13 = vrot.slane %v46_v35, %v513_v7  ;;  %v518_v15 = vrot.slane %v46_v35, %v517_v8 }
  0xc6   :  { %419 = vmatpush1.bf16.msra.mxu1 %v358_v56 }
  0xc9   :  { %1004 = vmatmul.mubr.msk.bf16.vlgmr.msra.gmra.mrb[0].mxu1 %vm346_vm9, %v1546_v42 }
  0xca   :  { %877 = vmatprep.mubr.bf16.mxu1 %v1277_v12 }
  0xce   :  { %v344_v26 = vpop.permute.xlu0 %343 }
 0x182   :  { %v403_v39 = vpop.f32.mrb[0].mxu0 }
 0x183   :  { %v404_v40 = vadd.f32 %v403_v39, %v344_v26  ;;  %v405_v41 = vpop.f32.mrb[1].mxu0 }
 0x184   :  { %v406_v34 = vadd.f32 %v405_v41, %v344_v26  ;;  %v407_v44 = vpop.f32.mrb[2].mxu0 }
 0x185   :  { %v492_v47 = vmax.f32 %v404_v40, 0.0  ;;  %v408_v42 = vpop.f32.mrb[3].mxu0 }
 0x186   :  { %v493_v48 = vmax.f32 %v406_v34, 0.0 }
 0x187   :  { %v1637_v51 = vmul.f32 %v502_v31, %v492_v47 }
 0x188   :  { %v1639_v16 = vmul.f32 %v506_v43, %v493_v48 }
 0x189   :  { %637 = vrot.lane.b32.xlu1 %v1637_v51, %s1274_s12  ;;  %661 = vrot.lane.b32.xlu0 %v1637_v51, %s1276_s14 }
 0x18a   :  { %v1125_v33 = vpack.i.bf16 %v1639_v16, %v1637_v51 }
 0x18d   :  { %1126 = vrot.lane.b32.xlu1 %v1125_v33, %s1270_s9  ;;  %1136 = vrot.lane.b32.xlu0 %v1125_v33, %s1273_s11 }
 0x191   :  { %1131 = vrot.lane.b32.xlu1 %v1125_v33, %s1271_s0 }
 0x195   :  { %1141 = vrot.lane.b32.xlu1 %v1125_v33, %s1272_s10 }
 0x196   :  { %v485_v38 = vpop.f32.mrb[4].mxu0 }
 0x197   :  { %v487_v53 = vpop.f32.mrb[5].mxu0  ;;  %v486_v6 = vadd.f32 %v485_v38, %v344_v26 }
 0x198   :  { %v489_v17 = vpop.f32.mrb[6].mxu0  ;;  %v488_v55 = vadd.f32 %v487_v53, %v344_v26 }
 0x199   :  { %v490_v32 = vpop.f32.mrb[7].mxu0  ;;  %v496_v14 = vmax.f32 %v486_v6, 0.0 }
 0x19a   :  { %v497_v52 = vmax.f32 %v488_v55, 0.0 }
 0x19b   :  { %v1671_v30 = vmul.f32 %v518_v15, %v496_v14 }
 0x19c   :  { %v444_v36 = vpop.f32.mrb[0].mxu1  ;;  %v1655_v63 = vmul.f32 %v522_v61, %v497_v52 }
 0x19d   :  { %v445_v49 = vadd.f32 %v444_v36, %v344_v26  ;;  %v446_v25 = vpop.f32.mrb[1].mxu1 }
 0x19e   :  { %v448_v58 = vpop.f32.mrb[2].mxu1  ;;  %v447_v1 = vadd.f32 %v446_v25, %v344_v26 }
 0x19f   :  { %v494_v59 = vmax.f32 %v445_v49, 0.0  ;;  %v449_v50 = vpop.f32.mrb[3].mxu1 }
 0x1a0   :  { %v495_v10 = vmax.f32 %v447_v1, 0.0 }
 0x1a1   :  { %v1651_v46 = vmul.f32 %v510_v23, %v494_v59 }
 0x1a2   :  { %v1669_v28 = vmul.f32 %v514_v13, %v495_v10 }
 0x1a3   :  { %v1145_v45 = vpack.i.bf16 %v1651_v46, %v1639_v16  ;;  %v1165_v0 = vpack.i.bf16 %v1651_v46, %v1655_v63 }
 0x1a4   :  { %v1180_v22 = vpack.i.bf16 %v1671_v30, %v1669_v28  ;;  %v1195_v57 = vpack.i.bf16 %v1669_v28, %v1651_v46 }
 0x1a5   :  { %1146 = vrot.lane.b32.xlu0 %v1145_v45, %s1274_s12  ;;  %1156 = vrot.lane.b32.xlu1 %v1145_v45, %s1275_s13 }
 0x1a9   :  { %1151 = vrot.lane.b32.xlu0 %v1145_v45, %s1276_s14  ;;  %1166 = vrot.lane.b32.xlu1 %v1165_v0, %s1271_s0 }
 0x1ad   :  { %1161 = vrot.lane.b32.xlu0 %v1165_v0, %s1270_s9  ;;  %617 = vrot.lane.b32.xlu1 %v1655_v63, %s1272_s10 }
 0x1b1   :  { %1171 = vrot.lane.b32.xlu0 %v1165_v0, %s1273_s11  ;;  %685 = vrot.lane.b32.xlu1 %v1637_v51, %s1275_s13 }
 0x1b5   :  { %1176 = vrot.lane.b32.xlu0 %v1125_v33, %s1278_s15  ;;  %713 = vrot.lane.b32.xlu1 %v1651_v46, %s1278_s15 }
 0x1b9   :  { %1181 = vrot.lane.b32.xlu0 %v1180_v22, %s1270_s9  ;;  %1186 = vrot.lane.b32.xlu1 %v1180_v22, %s1271_s0 }
 0x1bd   :  { %1191 = vrot.lane.b32.xlu0 %v1180_v22, %s1273_s11  ;;  %1196 = vrot.lane.b32.xlu1 %v1195_v57, %s1272_s10 }
 0x1c1   :  { %615 = vrot.lane.b32.xlu0 %v1671_v30, %s1272_s10  ;;  %1201 = vrot.lane.b32.xlu1 %v1180_v22, %s1274_s12 }
 0x1c5   :  { %647 = vrot.lane.b32.xlu0 %v1655_v63, %s1274_s12  ;;  %1206 = vrot.lane.b32.xlu1 %v1180_v22, %s1276_s14 }
 0x1c9   :  { %671 = vrot.lane.b32.xlu0 %v1655_v63, %s1276_s14  ;;  %1211 = vrot.lane.b32.xlu1 %v1180_v22, %s1275_s13 }
 0x1cd   :  { %695 = vrot.lane.b32.xlu0 %v1655_v63, %s1275_s13  ;;  %1216 = vrot.lane.b32.xlu1 %v1180_v22, %s1278_s15 }
 0x1d1   :  { %719 = vrot.lane.b32.xlu0 %v1655_v63, %s1278_s15  ;;  %821 = vperm.xlu1 %1220, %v818_v62  }
 0x1fb   :  { %v1701_v29 = vpop.permute.xlu1 %637  ;;  %v1713_v39 = vpop.permute.xlu0 %661 }
 0x1ff   :  { %v1703_v18 = vpop.permute.xlu1 %1126  ;;  %v1715_v40 = vpop.permute.xlu0 %1136 }
 0x200   :  { %v1129_v21 = vunpack.i.h.bf16 %v1703_v18  ;;  %v1128_v24 = vunpack.i.l.bf16 %v1703_v18  ;;  %v1139_v43 = vunpack.i.h.bf16 %v1715_v40  ;;  %v1138_v44 = vunpack.i.l.bf16 %v1715_v40 }
 0x202   :  { %v551_v26 = vsel %vm61_vm0, %v1128_v24, %v1129_v21  ;;  %v599_v17 = vsel %vm111_vm2, %v1138_v44, %v1139_v43 }
 0x203   :  { %v1132_v56 = vpop.permute.xlu1 %1131 }
 0x204   :  { %v1134_v60 = vunpack.i.h.bf16 %v1132_v56  ;;  %v1133_v27 = vunpack.i.l.bf16 %v1132_v56 }
 0x206   :  { %v575_v35 = vsel %vm86_vm1, %v1133_v27, %v1134_v60 }
 0x207   :  { %v789_v37 = vpack.c.bf16 %v575_v35, %v551_v26  ;;  %v1717_v31 = vpop.permute.xlu1 %1141 }
 0x208   :  { %v1144_v48 = vunpack.i.h.bf16 %v1717_v31  ;;  %v1143_v33 = vunpack.i.l.bf16 %v1717_v31 }
 0x209   :  { %845 = vmatprep.subr.bf16.mxu1 %v789_v37 }
 0x20a   :  { %v623_v20 = vsel %vm136_vm3, %v1143_v33, %v1144_v48 }
 0x20b   :  { %v795_v50 = vpack.c.bf16 %v623_v20, %v599_v17 }
 0x217   :  { %v1719_v41 = vpop.permute.xlu0 %1146  ;;  %v1721_v34 = vpop.permute.xlu1 %1156 }
 0x218   :  { %v1149_v32 = vunpack.i.h.bf16 %v1719_v41  ;;  %v1148_v36 = vunpack.i.l.bf16 %v1719_v41  ;;  %v1159_v1 = vunpack.i.h.bf16 %v1721_v34  ;;  %v1158_v7 = vunpack.i.l.bf16 %v1721_v34 }
 0x21a   :  { %v652_v0 = vsel %vm167_vm4, %v1148_v36, %v1149_v32  ;;  %v653_v10 = vsel %vm167_vm4, %v1701_v29, %v1148_v36  ;;  %v700_v26 = vsel %vm217_vm5, %v1158_v7, %v1159_v1 }
 0x21b   :  { %v1725_v47 = vpop.permute.xlu0 %1151  ;;  %v1727_v42 = vpop.permute.xlu1 %1166  ;;  %v801_v57 = vpack.c.bf16 %v652_v0, %v1639_v16  ;;  %v800_v16 = vpack.c.bf16 %v653_v10, %v1637_v51 }
 0x21c   :  { %v1168_v38 = vunpack.i.l.bf16 %v1727_v42  ;;  %v1154_v52 = vunpack.i.h.bf16 %v1725_v47  ;;  %v1153_v61 = vunpack.i.l.bf16 %v1725_v47  ;;  %v1169_v13 = vunpack.i.h.bf16 %v1727_v42 }
 0x21e   :  { %v576_v49 = vsel %vm86_vm1, %v1168_v38, %v1133_v27  ;;  %v676_v27 = vsel %vm192_vm6, %v1153_v61, %v1154_v52  ;;  %v574_v35 = vsel %vm86_vm1, %v1134_v60, %v1169_v13  ;;  %v677_v60 = vsel %vm192_vm6, %v1713_v39, %v1153_v61 }
 0x21f   :  { %v1732_v53 = vpop.permute.xlu0 %1161  ;;  %v1734_v54 = vpop.permute.xlu1 %617 }
 0x220   :  { %v1163_v55 = vunpack.i.l.bf16 %v1732_v53  ;;  %v624_v6 = vsel %vm136_vm3, %v1734_v54, %v1143_v33  ;;  %v1164_v62 = vunpack.i.h.bf16 %v1732_v53  ;;  %v807_v33 = vpack.c.bf16 %v700_v26, %v676_v27 }
 0x222   :  { %v552_v23 = vsel %vm61_vm0, %v1163_v55, %v1128_v24  ;;  %v550_v36 = vsel %vm61_vm0, %v1129_v21, %v1164_v62 }
 0x223   :  { %v788_v25 = vpack.c.bf16 %v576_v49, %v552_v23  ;;  %v1755_v58 = vpop.permute.xlu0 %1171  ;;  %v1757_v59 = vpop.permute.xlu1 %685 }
 0x224   :  { %v1173_v45 = vunpack.i.l.bf16 %v1755_v58  ;;  %v701_v51 = vsel %vm217_vm5, %v1757_v59, %v1158_v7  ;;  %v1174_v18 = vunpack.i.h.bf16 %v1755_v58 }
 0x225   :  { %846 = vmatpush1.bf16.msra.mxu1 %v788_v25 }
 0x226   :  { %v600_v8 = vsel %vm111_vm2, %v1173_v45, %v1138_v44  ;;  %847 = vmatprep.subr.bf16.mxu1 %v795_v50 }
 0x227   :  { %v794_v14 = vpack.c.bf16 %v624_v6, %v600_v8  ;;  %v1779_v15 = vpop.permute.xlu0 %1176  ;;  %v1781_v22 = vpop.permute.xlu1 %713  ;;  %v790_v6 = vpack.c.bf16 %v574_v35, %v550_v36  ;;  %v806_v8 = vpack.c.bf16 %v701_v51, %v677_v60 }
 0x228   :  { %v1179_v24 = vunpack.i.h.bf16 %v1779_v15  ;;  %v1178_v56 = vunpack.i.l.bf16 %v1779_v15 }
 0x229   :  { %848 = vmatpush1.bf16.msra.mxu1 %v794_v14 }
 0x22a   :  { %849 = vmatprep.subr.bf16.mxu1 %v801_v57  ;;  %v725_v17 = vsel %vm242_vm7, %v1178_v56, %v1179_v24  ;;  %v724_v23 = vsel %vm242_vm7, %v1179_v24, %v1781_v22 }
 0x22b   :  { %v1182_v37 = vpop.permute.xlu0 %1181  ;;  %v1187_v44 = vpop.permute.xlu1 %1186  ;;  %v812_v7 = vpack.c.bf16 %v725_v17, %v725_v17  ;;  %v813_v57 = vpack.c.bf16 %v724_v23, %v724_v23 }
 0x22c   :  { %v1183_v20 = vunpack.i.l.bf16 %v1182_v37  ;;  %v1188_v49 = vunpack.i.l.bf16 %v1187_v44  ;;  %v1184_v25 = vunpack.i.h.bf16 %v1182_v37  ;;  %v1189_v50 = vunpack.i.h.bf16 %v1187_v44 }
 0x22d   :  { %850 = vmatpush1.bf16.msra.mxu1 %v800_v16  ;;  %v598_v16 = vsel %vm111_vm2, %v1139_v43, %v1174_v18  ;;  %v828_v42 = vsel %vm350_vm8, %v812_v7, 0 }
 0x22e   :  { %851 = vmatprep.subr.bf16.mxu1 %v807_v33  ;;  %v549_v21 = vsel %vm61_vm0, %v1164_v62, %v1183_v20  ;;  %v573_v0 = vsel %vm86_vm1, %v1169_v13, %v1188_v49  ;;  %v547_v62 = vsel %vm61_vm0, %v1184_v25, %v1163_v55  ;;  %v571_v13 = vsel %vm86_vm1, %v1189_v50, %v1168_v38 }
 0x22f   :  { %v1192_v61 = vpop.permute.xlu0 %1191  ;;  %v1197_v10 = vpop.permute.xlu1 %1196  ;;  %v791_v14 = vpack.c.bf16 %v573_v0, %v549_v21  ;;  %v548_v35 = vsel %vm61_vm0, %v1183_v20, %v1184_v25  ;;  %v572_v38 = vsel %vm86_vm1, %v1188_v49, %v1189_v50  ;;  %v793_v17 = vpack.c.bf16 %v571_v13, %v547_v62  ;;  %v1852_v20 = vld [vmem:[%s1942_s3] sm:$0xf]  ;;  %s1279_s3 = smov [#allocation6]  }
 0x230   :  { %v1193_v24 = vunpack.i.l.bf16 %v1192_v61  ;;  %v1199_v27 = vunpack.i.h.bf16 %v1197_v10  ;;  %v1198_v26 = vunpack.i.l.bf16 %v1197_v10  ;;  %v1194_v40 = vunpack.i.h.bf16 %v1192_v61  ;;  %s992_s22 = sshll.u32 %s1279_s3, 4  ;;  %s993_s22 = int_to_ptr.vmem [resolvable:$true] %s992_s22 }
 0x231   :  { %852 = vmatpush1.bf16.msra.mxu1 %v806_v8  ;;  %886 = vmatprep.subr.bf16.mxu0 %v791_v14  ;;  %v792_v23 = vpack.c.bf16 %v572_v38, %v548_v35  ;;  %s1243_s23 = scalar_lea.vmem %s993_s22, 768  ;;  %p1248_p9 = scmp.lt.s32.totalorder %s993_s22, %s993_s22 }
 0x232   :  { %v622_v53 = vsel %vm136_vm3, %v1144_v48, %v1198_v26  ;;  %1007 = vmatprep.subr.msk.bf16.mxu1 %vm350_vm8, %v813_v57  ;;  %887 = vmatpush1.bf16.msra.mxu0 %v790_v6  ;;  %v597_v43 = vsel %vm111_vm2, %v1174_v18, %v1193_v24  ;;  %v621_v31 = vsel %vm136_vm3, %v1198_v26, %v1199_v27  ;;  %p1244_p8 = scmp.ne.s32.totalorder %s993_s22, %s1243_s23  ;;  %p1249_p10 = scmp.lt.s32.totalorder %s1243_s23, %s1243_s23 }
 0x233   :  { %v616_v55 = vpop.permute.xlu0 %615  ;;  %v1202_v37 = vpop.permute.xlu1 %1201  ;;  %v796_v44 = vpack.c.bf16 %v622_v53, %v598_v16  ;;  %v797_v51 = vpack.c.bf16 %v621_v31, %v597_v43 }
 0x234   :  { %v1204_v33 = vunpack.i.h.bf16 %v1202_v37  ;;  %v1203_v48 = vunpack.i.l.bf16 %v1202_v37  ;;  %v619_v36 = vsel %vm136_vm3, %v616_v55, %v1734_v54  ;;  %v595_v54 = vsel %vm111_vm2, %v1194_v40, %v1173_v45  ;;  %p1250_p11 = por %p1249_p10, %p1248_p9 }
 0x235   :  { %854 = vmatpush1.bf16.msra.mxu1 %v828_v42  ;;  %888 = vmatprep.subr.bf16.mxu0 %v797_v51  ;;  %v620_v41 = vsel %vm136_vm3, %v1199_v27, %v616_v55  ;;  %v799_v21 = vpack.c.bf16 %v619_v36, %v595_v54  ;;  %v596_v45 = vsel %vm111_vm2, %v1193_v24, %v1194_v40 }
 0x236   :  { %v651_v49 = vsel %vm167_vm4, %v1149_v32, %v1203_v48  ;;  %927 = vmatprep.subr.bf16.mxu1 %v793_v17  ;;  %v650_v60 = vsel %vm167_vm4, %v1203_v48, %v1204_v33  ;;  %889 = vmatpush1.bf16.msra.mxu0 %v796_v44  ;;  %v798_v7 = vpack.c.bf16 %v620_v41, %v596_v45  ;;  %p1251_p12 = pnand %p1250_p11, %p1244_p8 }
 0x237   :  { %v648_v25 = vpop.permute.xlu0 %647  ;;  %v1207_v50 = vpop.permute.xlu1 %1206  ;;  %v803_v18 = vpack.c.bf16 %v650_v60, %v1669_v28  ;;  %v802_v32 = vpack.c.bf16 %v651_v49, %v1651_v46 }
 0x238   :  { %1008 = vmatmul.mubr.msk.bf16.vlgmr.msra.gmra.mrb[4].mxu1 %vm346_vm9, %v1852_v20  ;;  %v654_v58 = vsel %vm167_vm4, %v648_v25, %v1701_v29  ;;  %v1209_v28 = vunpack.i.h.bf16 %v1207_v50  ;;  %v1208_v0 = vunpack.i.l.bf16 %v1207_v50  ;;  %v649_v8 = vsel %vm167_vm4, %v1204_v33, %v648_v25 }
 0x239   :  { %890 = vmatprep.subr.bf16.mxu0 %v803_v18  ;;  %928 = vmatpush1.bf16.msra.mxu1 %v792_v23  ;;  %v805_v61 = vpack.c.bf16 %v654_v58, %v1655_v63  ;;  %v804_v24 = vpack.c.bf16 %v649_v8, %v1671_v30 }
 0x23a   :  { %929 = vmatprep.subr.bf16.mxu1 %v799_v21  ;;  %959 = vmatprep.mubr.bf16.mxu1 %v1277_v12  ;;  %v675_v14 = vsel %vm192_vm6, %v1154_v52, %v1208_v0  ;;  %v674_v57 = vsel %vm192_vm6, %v1208_v0, %v1209_v28 }
 0x23b   :  { %v672_v46 = vpop.permute.xlu0 %671  ;;  %v1212_v6 = vpop.permute.xlu1 %1211  ;;  %891 = vmatpush1.bf16.msra.mxu0 %v802_v32 }
 0x23c   :  { %v1214_v29 = vunpack.i.h.bf16 %v1212_v6  ;;  %v1213_v10 = vunpack.i.l.bf16 %v1212_v6  ;;  %v678_v47 = vsel %vm192_vm6, %v672_v46, %v1713_v39  ;;  %v673_v30 = vsel %vm192_vm6, %v1209_v28, %v672_v46 }
 0x23d   :  { %930 = vmatpush1.bf16.msra.mxu1 %v798_v7 }
 0x23e   :  { %v699_v12 = vsel %vm217_vm5, %v1159_v1, %v1213_v10  ;;  %931 = vmatprep.subr.bf16.mxu1 %v805_v61  ;;  %v698_v63 = vsel %vm217_vm5, %v1213_v10, %v1214_v29 }
 0x23f   :  { %v808_v27 = vpack.c.bf16 %v699_v12, %v675_v14  ;;  %v696_v52 = vpop.permute.xlu0 %695  ;;  %v1217_v26 = vpop.permute.xlu1 %1216  ;;  %v809_v34 = vpack.c.bf16 %v698_v63, %v674_v57 }
 0x240   :  { %v697_v1 = vsel %vm217_vm5, %v1214_v29, %v696_v52  ;;  %v702_v62 = vsel %vm217_vm5, %v696_v52, %v1757_v59  ;;  %v1219_v13 = vunpack.i.h.bf16 %v1217_v26  ;;  %v1218_v16 = vunpack.i.l.bf16 %v1217_v26 }
 0x241   :  { %v811_v35 = vpack.c.bf16 %v702_v62, %v678_v47  ;;  %892 = vmatprep.subr.bf16.mxu0 %v809_v34  ;;  %932 = vmatpush1.bf16.msra.mxu1 %v804_v24  ;;  %v810_v42 = vpack.c.bf16 %v697_v1, %v673_v30 }
 0x242   :  { %v722_v39 = vsel %vm242_vm7, %v1218_v16, %v1219_v13  ;;  %893 = vmatpush1.bf16.msra.mxu0 %v808_v27  ;;  %v723_v53 = vsel %vm242_vm7, %v1781_v22, %v1218_v16 }
 0x243   :  { %v815_v38 = vpack.c.bf16 %v722_v39, %v722_v39  ;;  %v720_v40 = vpop.permute.xlu0 %719  ;;  %933 = vmatprep.subr.bf16.mxu1 %v811_v35  ;;  %v814_v59 = vpack.c.bf16 %v723_v53, %v723_v53 }
 0x244   :  { %v721_v55 = vsel %vm242_vm7, %v1219_v13, %v720_v40  ;;  %v726_v37 = vsel %vm242_vm7, %v720_v40, %v1178_v56 }
 0x245   :  { %v816_v43 = vpack.c.bf16 %v721_v55, %v721_v55  ;;  %v817_v31 = vpack.c.bf16 %v726_v37, %v726_v37  ;;  %1009 = vmatprep.subr.msk.bf16.mxu0 %vm350_vm8, %v815_v38  ;;  %934 = vmatpush1.bf16.msra.mxu1 %v810_v42  ;;  %v834_v22 = vsel %vm350_vm8, %v814_v59, 0 }
 0x246   :  { %895 = vmatpush1.bf16.msra.mxu0 %v834_v22 }
 0x247   :  { %1011 = vmatprep.subr.msk.bf16.mxu1 %vm350_vm8, %v817_v31  ;;  %v840_v44 = vsel %vm350_vm8, %v816_v43, 0 }
 0x249   :  { %1010 = vmatmul.mubr.msk.bf16.vlgmr.msra.gmra.mrb[8].mxu0 %vm346_vm9, %v1852_v20  ;;  %936 = vmatpush1.bf16.msra.mxu1 %v840_v44 }
 0x24c   :  { %1012 = vmatmul.mubr.msk.bf16.vlgmr.msra.gmra.mrb[8].mxu1 %vm346_vm9, %v1852_v20 }
 0x250   :  { %v822_v19 = vpop.permute.xlu1 %821 }
 0x30b   :  { %v879_v15 = vpop.f32.mrb[4].mxu1 }
 0x30c   :  { %v880_v56 = vadd.f32 %v879_v15, %v822_v19  ;;  %v881_v33 = vpop.f32.mrb[5].mxu1 }
 0x30d   :  { %v882_v48 = vadd.f32 %v881_v33, %v822_v19  ;;  %v883_v17 = vpop.f32.mrb[6].mxu1 }
 0x30e   :  { %v968_v36 = vadd.f32 %v880_v56, %v1331_v4  ;;  %v884_v51 = vpop.f32.mrb[7].mxu1 }
 0x30f   :  { %v969_v49 = vadd.f32 %v882_v48, %v1333_v5 }
 0x310   :  { %v974_v60 = vmax.f32 %v968_v36, 0.0 }
 0x311   :  { %v975_v23 = vmax.f32 %v969_v49, 0.0 }
 0x312   :  { %980 = vst [vmem:[#allocation6] sm:$0xff] %v974_v60 }
 0x313   :  { %981 = vst [vmem:[#allocation6 + $0x8] sm:$0xff] %v975_v23 }
 0x31c   :  { %v920_v54 = vpop.f32.mrb[8].mxu0 }
 0x31d   :  { %v921_v25 = vadd.f32 %v920_v54, %v822_v19  ;;  %v922_v50 = vpop.f32.mrb[9].mxu0 }
 0x31e   :  { %v923_v18 = vadd.f32 %v922_v50, %v822_v19  ;;  %v924_v20 = vpop.f32.mrb[10].mxu0 }
 0x31f   :  { %v970_v41 = vadd.f32 %v921_v25, %v1345_v9  ;;  %v925_v21 = vpop.f32.mrb[11].mxu0  ;;  %v961_v32 = vpop.f32.mrb[8].mxu1 }
 0x320   :  { %v971_v58 = vadd.f32 %v923_v18, %v1360_v11  ;;  %v962_v45 = vadd.f32 %v961_v32, %v822_v19  ;;  %v963_v4 = vpop.f32.mrb[9].mxu1 }
 0x321   :  { %v976_v28 = vmax.f32 %v970_v41, 0.0  ;;  %v964_v0 = vadd.f32 %v963_v4, %v822_v19  ;;  %v965_v5 = vpop.f32.mrb[10].mxu1 }
 0x322   :  { %v977_v7 = vmax.f32 %v971_v58, 0.0  ;;  %v972_v46 = vadd.f32 %v962_v45, %v1327_v2  ;;  %v966_v6 = vpop.f32.mrb[11].mxu1 }
 0x323   :  { %982 = vst [vmem:[#allocation6 + $0x10] sm:$0xff] %v976_v28  ;;  %v973_v8 = vadd.f32 %v964_v0, %v1329_v3 }
 0x324   :  { %983 = vst [vmem:[#allocation6 + $0x18] sm:$0xff] %v977_v7  ;;  %v978_v9 = vmax.f32 %v972_v46, 0.0 }
 0x325   :  { %v979_v61 = vmax.f32 %v973_v8, 0.0 }
 0x326   :  { %984 = vst [vmem:[#allocation6 + $0x20] sm:$0xff] %v978_v9 }
 0x327   :  { %985 = vst [vmem:[#allocation6 + $0x28] sm:$0xff] %v979_v61 }
 0x328   :  { %1254 = shalt.err (!%p1251_p12)
}
 0x329   :  { %s1255_s26 = scalar_lea.hbm %s1945_s6, 768 }
 0x32a   :  { %p1256_p13 = scmp.ne.s32.totalorder %s1945_s6, %s1255_s26  ;;  %p1259_p0 = scmp.lt.u32.totalorder %s1255_s26, %s1945_s6 }
 0x32c   :  { %p1261_p1 = pnand %p1259_p0, %p1256_p13 }
 0x32e   :  { %1264 = shalt.err (!%p1261_p1)
}
 0x32f   :  { %995 = dma.vmem_to_hbm [thread:$0]  %s993_s22, 768, %s1945_s6, [#allocation5]  }
 0x330   :  { %1267 = dma.done.wait [#allocation5], 768  }
 0x331   :  { %1268 = vsyncadd [#allocation5], 4294966528 }
 0x332   :  { %999 = vsyncpa [#allocation4], 1 }
 0x333   :  { %1000 = vsyncpa [#allocation5], 1 }

</bundles_post_ra>
